<compile_context>
chip_gen: v7x
topology: tpu7x:2x2x1
jax: 0.10.0
libtpu: 0.0.40
codegen_flags: <defaults>
</compile_context>

<pallas_src>
import math

import numpy as np
import jax
import jax.numpy as jnp
from jax.experimental import pallas as pl
from jax.experimental.pallas import tpu as pltpu

EPS = 1e-7             # Consts.Eps
NEG_BIG = -1.0e9       # value added to randomly-dropped logits


def _vmem_capacity_bytes():
    """Per-core VMEM capacity; conservative 64 MiB (v7x) fallback."""
    try:
        info = pltpu.get_tpu_info()
        for attr in ("vmem_capacity_bytes", "vmem_size_bytes", "vmem_bytes"):
            v = getattr(info, attr, None)
            if v:
                return int(v)
    except Exception:
        pass
    return 64 * 1024 * 1024


def _pick_hw_tile(hw, k, d, budget_bytes):
    """Largest H*W tile whose per-step VMEM footprint (streamed blocks,
    resident codebook/aux, and live (K, t) intermediates) fits the budget.
    Prefers the whole HW extent, else multiples of 128 (lane-dense)."""
    def per_step(t):
        stream = 4 * t * (d + 3 * k + 2)    # x, drop, gumbel in; logit, 2 code rows out
        resident = 4 * k * (d + 2)          # codebook + [c2, scale]
        live = 20 * t * k                   # ~5 live f32 (K, t) intermediates
        return 2 * (stream + resident) + live   # 2x: double-buffered blocks
    if per_step(hw) <= budget_bytes:
        return hw
    for step in (128, 8):
        cands = [t for t in range(step, hw, step) if per_step(t) <= budget_bytes]
        if cands:
            return max(cands)
    raise ValueError("codebook too large for the VMEM budget; reduce K or raise budget")


def _mcq_kernel(x_ref, cb_ref, aux_ref, drop_ref, gum_ref, logit_ref, codes_ref):
    """One grid cell = (codebook group m, batch n, hw tile).

    Layout: K on sublanes, H*W on lanes (lane-dense for small K)."""
    xv = x_ref[0, 0]              # (D, hw_t)  f32
    cb = cb_ref[0]                # (K, D)     f32
    c2 = aux_ref[0, :, 0:1]       # (K, 1)     ||c||^2 (precomputed)
    s = aux_ref[0, :, 1:2]        # (K, 1)     max(temp_m, eps) / sqrt(K) (broadcast col)
    drop = drop_ref[0, 0]         # (K, hw_t)  -1e9 where dropped, else 0
    gum = gum_ref[0, 0]           # (K, hw_t)  Gumbel(0,1) noise

    # cross term on the MXU: (K, D) x (D, hw_t) -> (K, hw_t), contracting D
    # (for large D, casting inputs to bf16 here trades a little precision for
    #  2-3x MXU throughput; kept f32 to match the torch reference at D=8)
    inter = jax.lax.dot_general(
        cb, xv, dimension_numbers=(((1,), (0,)), ((), ())),
        preferred_element_type=jnp.float32)                          # (K, hw_t)
    x2 = jnp.sum(xv * xv, axis=0, keepdims=True)                     # (1, hw_t)
    dist = x2 + c2 - 2.0 * inter                                     # (K, hw_t)

    # logit = -dist / sqrt(K) * lower_bound(temperature, eps)  + random drop
    logit = drop - dist * s
    logit_ref[0, 0] = logit

    kk = logit.shape[0]
    iota_k = jax.lax.broadcasted_iota(jnp.int32, logit.shape, 0)

    # code = argmax(logit, K axis)  (first occurrence, like torch.argmax)
    mx = jnp.max(logit, axis=0, keepdims=True)
    code = jnp.min(jnp.where(logit == mx, iota_k, kk), axis=0, keepdims=True)   # (1, hw_t)

    # gumbel argmax (tau = 1, hard=True): forward value is the hard one-hot of
    # argmax(logit + g); the one-hot itself is expanded cheaply downstream.
    gl = logit + gum
    gmx = jnp.max(gl, axis=0, keepdims=True)
    gcode = jnp.min(jnp.where(gl == gmx, iota_k, kk), axis=0, keepdims=True)    # (1, hw_t)

    codes_ref[0, 0, 0:1, :] = code
    codes_ref[0, 0, 1:2, :] = gcode


def multi_codebook_quantize(x_nchw, codebook, freq_ema, temperature, key):
    """Forward pass of _multiCodebookQuantization.

    x_nchw:      (N, M*D, H, W) float32
    codebook:    (M, K, D)      float32
    freq_ema:    (M, K)         float32
    temperature: (M,) (or (M,1,1,1)) float32
    Returns (sample, code, oneHot, logit) shaped
            (N,M,H,W,K), (N,M,H,W) int32, (N,M,H,W,K), (N,M,H,W,K).
    (code is int32 here; torch returns int64.)
    """
    n, c, h, w = x_nchw.shape
    m, k, d = codebook.shape
    assert c == m * d
    hw = h * w
    bits = math.log2(k)
    scale = math.sqrt(k)

    # NCHW is already (N, M, D, H*W) after a pure reshape -> no input transpose.
    x = x_nchw.reshape(n, m, d, hw).astype(jnp.float32)

    # --- tiny scalar/noise glue in JAX ------------------------------------
    # random drop: rand ** e < freqEMA  <=>  rand < freqEMA ** (1/e)
    code_usage = jnp.clip(jnp.mean((freq_ema > EPS).astype(jnp.float32)), 0.0, 1.0)
    exponent = -(bits - 1.0) * code_usage ** 2 + bits                 # scalar in [1, bits]
    thr = jnp.power(freq_ema.astype(jnp.float32), 1.0 / exponent)     # (M, K)

    c2 = jnp.sum(codebook.astype(jnp.float32) ** 2, axis=-1)          # (M, K)
    s_m = jnp.maximum(temperature.reshape(m).astype(jnp.float32), EPS) / scale
    aux = jnp.stack([c2, jnp.broadcast_to(s_m[:, None], (m, k))], axis=-1)  # (M, K, 2)

    # --- VMEM-aware tile choice + HW padding --------------------------------
    cap = _vmem_capacity_bytes()
    budget = int(0.60 * cap)
    vmem_limit = int(min(0.90 * cap, 120 * 1024 * 1024))
    hw_t = _pick_hw_tile(hw, k, d, budget)
    hw_pad = -(-hw // hw_t) * hw_t
    if hw_pad != hw:
        x = jnp.pad(x, ((0, 0), (0, 0), (0, 0), (0, hw_pad - hw)))
    hw_tiles = hw_pad // hw_t

    # noise streams, already in the kernel's (N, M, K, HW) layout
    k_drop, k_gum = jax.random.split(key)
    u_drop = jax.random.uniform(k_drop, (n, m, k, hw_pad), dtype=jnp.float32)
    drop_add = jnp.where(u_drop < thr[None, :, :, None], NEG_BIG, 0.0).astype(jnp.float32)
    gumbel = jax.random.gumbel(k_gum, (n, m, k, hw_pad), dtype=jnp.float32)

    out_shape = (
        jax.ShapeDtypeStruct((n, m, k, hw_pad), jnp.float32),   # logit (K on sublane)
        jax.ShapeDtypeStruct((n, m, 2, hw_pad), jnp.int32),     # [argmax code, gumbel code]
    )

    # grid: m slowest -> codebook / aux block indices constant across the inner
    # (n, hw) steps, so their DMAs are skipped after the first fetch.
    grid_spec = pl.GridSpec(
        grid=(m, n, hw_tiles),
        in_specs=[
            pl.BlockSpec((1, 1, d, hw_t), lambda mi, ni, hi: (ni, mi, 0, hi)),  # x
            pl.BlockSpec((1, k, d), lambda mi, ni, hi: (mi, 0, 0)),             # codebook
            pl.BlockSpec((1, k, 2), lambda mi, ni, hi: (mi, 0, 0)),             # [c2, scale]
            pl.BlockSpec((1, 1, k, hw_t), lambda mi, ni, hi: (ni, mi, 0, hi)),  # drop add
            pl.BlockSpec((1, 1, k, hw_t), lambda mi, ni, hi: (ni, mi, 0, hi)),  # gumbel
        ],
        out_specs=[
            pl.BlockSpec((1, 1, k, hw_t), lambda mi, ni, hi: (ni, mi, 0, hi)),
            pl.BlockSpec((1, 1, 2, hw_t), lambda mi, ni, hi: (ni, mi, 0, hi)),
        ],
    )

    logit4, codes4 = pl.pallas_call(
        _mcq_kernel,
        out_shape=out_shape,
        grid_spec=grid_spec,
        compiler_params=pltpu.CompilerParams(
            dimension_semantics=("parallel", "parallel", "parallel"),
            vmem_limit_bytes=vmem_limit,
        ),
    )(x, codebook.astype(jnp.float32), aux, drop_add, gumbel)

    # cheap downstream expansion of the one-hots (saves 2 of 3 (K,HW) kernel stores)
    logit = jnp.moveaxis(logit4[..., :hw], 2, 3).reshape(n, m, h, w, k)
    code = codes4[:, :, 0, :hw]                              # (n, m, hw) int32
    gcode = codes4[:, :, 1, :hw]
    onehot = jax.nn.one_hot(code, k, dtype=jnp.float32).reshape(n, m, h, w, k)
    sample = jax.nn.one_hot(gcode, k, dtype=jnp.float32).reshape(n, m, h, w, k)
    code = code.reshape(n, m, h, w)
    return sample, code, onehot, logit


if __name__ == "__main__":
    # small shapes consistent with the module: N=2, M=2 groups, K=16 codewords,
    # D=8 dims/group -> C = M*D = 16 channels, spatial 8x8
    n, m, k, d, h, w = 2, 2, 16, 8, 8, 8

    key = jax.random.PRNGKey(0)
    k_x, k_cb, k_rand = jax.random.split(key, 3)

    x = jax.random.normal(k_x, (n, m * d, h, w), dtype=jnp.float32)
    codebook = jax.random.normal(k_cb, (m, k, d), dtype=jnp.float32)      # nn.Parameter
    freq_ema = jnp.full((m, k), 1.0 / k, dtype=jnp.float32)               # nn.Parameter
    temperature = jnp.ones((m,), dtype=jnp.float32)                       # torch.ones((m,1,1,1))

    outs = multi_codebook_quantize(x, codebook, freq_ema, temperature, k_rand)
    outs = jax.tree_util.tree_map(jax.block_until_ready, outs)
    sample, code, onehot, logit = outs

    # ---- sanity checks -----------------------------------------------------
    assert sample.shape == (n, m, h, w, k)
    assert code.shape == (n, m, h, w)
    assert onehot.shape == (n, m, h, w, k)
    assert logit.shape == (n, m, h, w, k)

    l_np = np.asarray(logit)
    c_np = np.asarray(code)
    s_np = np.asarray(sample)
    o_np = np.asarray(onehot)

    np.testing.assert_array_equal(o_np.sum(-1), 1.0)
    np.testing.assert_array_equal(s_np.sum(-1), 1.0)
    assert c_np.min() >= 0 and c_np.max() < k
    np.testing.assert_array_equal(c_np, l_np.argmax(-1))
    np.testing.assert_array_equal(o_np.argmax(-1), c_np)

    # non-dropped logits match the deterministic distance-based value
    xr = np.asarray(x).reshape(n, m, d, h * w).transpose(0, 1, 3, 2)      # (n,m,hw,d)
    cb_np = np.asarray(codebook)
    x2 = (xr ** 2).sum(-1, keepdims=True)
    c2 = (cb_np ** 2).sum(-1)
    inter = np.einsum('nmpd,mkd->nmpk', xr, cb_np)
    dist = x2 + c2[None, :, None, :] - 2.0 * inter
    det = (-dist / math.sqrt(k)) * np.maximum(np.asarray(temperature), EPS)[None, :, None, None]
    det = det.reshape(n, m, h, w, k)
    dropped = l_np < -1.0e8
    np.testing.assert_allclose(l_np[~dropped], det[~dropped], rtol=2e-2, atol=0.25)
    # drop fraction should be around freqEMA = 1/K
    assert 0.0 <= float(dropped.mean()) < 0.3

    print("KERNEL_OK")
</pallas_src>

<mosaic_0001>
module attributes {stable_mosaic.version = 11 : i64} {
  func.func @_mcq_kernel(%arg0: i32, %arg1: i32, %arg2: i32, %arg3: memref<1x1x8x64xf32, #tpu.memory_space<vmem>>, %arg4: memref<1x16x8xf32, #tpu.memory_space<vmem>>, %arg5: memref<1x16x2xf32, #tpu.memory_space<vmem>>, %arg6: memref<1x1x16x64xf32, #tpu.memory_space<vmem>>, %arg7: memref<1x1x16x64xf32, #tpu.memory_space<vmem>>, %arg8: memref<1x1x16x64xf32, #tpu.memory_space<vmem>>, %arg9: memref<1x1x2x64xi32, #tpu.memory_space<vmem>>) attributes {dimension_semantics = [#tpu.dimension_semantics<parallel>, #tpu.dimension_semantics<parallel>, #tpu.dimension_semantics<parallel>], iteration_bounds = array<i64: 2, 2, 1>, scalar_prefetch = 0 : i64, scratch_operands = 0 : i64, tpu.core_type = #tpu.core_type<tc>, window_params = [{transform_indices = @transform_0, window_bounds = array<i64: 1, 1, 8, 64>}, {transform_indices = @transform_1, window_bounds = array<i64: 1, 16, 8>}, {transform_indices = @transform_2, window_bounds = array<i64: 1, 16, 2>}, {transform_indices = @transform_3, window_bounds = array<i64: 1, 1, 16, 64>}, {transform_indices = @transform_4, window_bounds = array<i64: 1, 1, 16, 64>}, {transform_indices = @transform_5, window_bounds = array<i64: 1, 1, 16, 64>}, {transform_indices = @transform_6, window_bounds = array<i64: 1, 1, 2, 64>}]} {
    %c0 = arith.constant 0 : index
    %c0_0 = arith.constant 0 : index
    %c0_1 = arith.constant 0 : index
    %c0_2 = arith.constant 0 : index
    %0 = vector.load %arg3[%c0, %c0_0, %c0_1, %c0_2] : memref<1x1x8x64xf32, #tpu.memory_space<vmem>>, vector<1x1x8x64xf32>
    %1 = vector.shape_cast %0 : vector<1x1x8x64xf32> to vector<8x64xf32>
    %c0_3 = arith.constant 0 : index
    %c0_4 = arith.constant 0 : index
    %c0_5 = arith.constant 0 : index
    %2 = vector.load %arg4[%c0_3, %c0_4, %c0_5] : memref<1x16x8xf32, #tpu.memory_space<vmem>>, vector<1x16x8xf32>
    %3 = vector.shape_cast %2 : vector<1x16x8xf32> to vector<16x8xf32>
    %c0_6 = arith.constant 0 : index
    %c0_7 = arith.constant 0 : index
    %c0_8 = arith.constant 0 : index
    %4 = vector.load %arg5[%c0_6, %c0_7, %c0_8] : memref<1x16x2xf32, #tpu.memory_space<vmem>>, vector<1x16x1xf32>
    %5 = vector.shape_cast %4 : vector<1x16x1xf32> to vector<16x1xf32>
    %c0_9 = arith.constant 0 : index
    %c0_10 = arith.constant 0 : index
    %c1 = arith.constant 1 : index
    %6 = vector.load %arg5[%c0_9, %c0_10, %c1] : memref<1x16x2xf32, #tpu.memory_space<vmem>>, vector<1x16x1xf32>
    %7 = vector.shape_cast %6 : vector<1x16x1xf32> to vector<16x1xf32>
    %c0_11 = arith.constant 0 : index
    %c0_12 = arith.constant 0 : index
    %c0_13 = arith.constant 0 : index
    %c0_14 = arith.constant 0 : index
    %8 = vector.load %arg6[%c0_11, %c0_12, %c0_13, %c0_14] : memref<1x1x16x64xf32, #tpu.memory_space<vmem>>, vector<1x1x16x64xf32>
    %9 = vector.shape_cast %8 : vector<1x1x16x64xf32> to vector<16x64xf32>
    %c0_15 = arith.constant 0 : index
    %c0_16 = arith.constant 0 : index
    %c0_17 = arith.constant 0 : index
    %c0_18 = arith.constant 0 : index
    %10 = vector.load %arg7[%c0_15, %c0_16, %c0_17, %c0_18] : memref<1x1x16x64xf32, #tpu.memory_space<vmem>>, vector<1x1x16x64xf32>
    %11 = vector.shape_cast %10 : vector<1x1x16x64xf32> to vector<16x64xf32>
    %cst = arith.constant dense<0.000000e+00> : vector<16x64xf32>
    %12 = tpu.matmul %3, %1, %cst {dimension_numbers = #tpu.dot_dimension_numbers<[1], [0], [0], [1], [0, 0, 1, 1], [], []>} : vector<16x8xf32>, vector<8x64xf32>, vector<16x64xf32> -> vector<16x64xf32>
    %13 = arith.mulf %1, %1 : vector<8x64xf32>
    %cst_19 = arith.constant dense<0.000000e+00> : vector<64xf32>
    %14 = vector.multi_reduction <add>, %13, %cst_19 [0] : vector<8x64xf32> to vector<64xf32>
    %15 = vector.shape_cast %14 : vector<64xf32> to vector<1x64xf32>
    %16 = vector.broadcast %15 : vector<1x64xf32> to vector<16x64xf32>
    %17 = vector.broadcast %5 : vector<16x1xf32> to vector<16x64xf32>
    %18 = arith.addf %16, %17 : vector<16x64xf32>
    %cst_20 = arith.constant 2.000000e+00 : f32
    %19 = vector.broadcast %cst_20 : f32 to vector<16x64xf32>
    %20 = arith.mulf %19, %12 : vector<16x64xf32>
    %21 = arith.subf %18, %20 : vector<16x64xf32>
    %22 = vector.broadcast %7 : vector<16x1xf32> to vector<16x64xf32>
    %23 = arith.mulf %21, %22 : vector<16x64xf32>
    %24 = arith.subf %9, %23 : vector<16x64xf32>
    %c0_21 = arith.constant 0 : index
    %c0_22 = arith.constant 0 : index
    %c0_23 = arith.constant 0 : index
    %c0_24 = arith.constant 0 : index
    %25 = vector.load %arg8[%c0_21, %c0_22, %c0_23, %c0_24] : memref<1x1x16x64xf32, #tpu.memory_space<vmem>>, vector<1x1x16x64xf32>
    %26 = vector.shape_cast %25 : vector<1x1x16x64xf32> to vector<16x64xf32>
    %27 = vector.shape_cast %24 : vector<16x64xf32> to vector<1x1x16x64xf32>
    tpu.vector_store %arg8[%c0_21, %c0_22, %c0_23, %c0_24], %27 {strides = array<i32>} : memref<1x1x16x64xf32, #tpu.memory_space<vmem>>, vector<1x1x16x64xf32>,
    %28 = tpu.iota {dimensions = array<i32: 0>} : vector<16x64xi32>
    %cst_25 = arith.constant dense<0xFF800000> : vector<64xf32>
    %29 = vector.multi_reduction <maximumf>, %24, %cst_25 [0] : vector<16x64xf32> to vector<64xf32>
    %30 = vector.shape_cast %29 : vector<64xf32> to vector<1x64xf32>
    %31 = vector.broadcast %30 : vector<1x64xf32> to vector<16x64xf32>
    %32 = arith.cmpf oeq, %24, %31 : vector<16x64xf32>
    %c16_i32 = arith.constant 16 : i32
    %33 = vector.broadcast %c16_i32 : i32 to vector<16x64xi32>
    %34 = arith.select %32, %28, %33 : vector<16x64xi1>, vector<16x64xi32>
    %cst_26 = arith.constant dense<2147483647> : vector<64xi32>
    %35 = vector.multi_reduction <minsi>, %34, %cst_26 [0] : vector<16x64xi32> to vector<64xi32>
    %36 = vector.shape_cast %35 : vector<64xi32> to vector<1x64xi32>
    %37 = arith.addf %24, %11 : vector<16x64xf32>
    %cst_27 = arith.constant dense<0xFF800000> : vector<64xf32>
    %38 = vector.multi_reduction <maximumf>, %37, %cst_27 [0] : vector<16x64xf32> to vector<64xf32>
    %39 = vector.shape_cast %38 : vector<64xf32> to vector<1x64xf32>
    %40 = vector.broadcast %39 : vector<1x64xf32> to vector<16x64xf32>
    %41 = arith.cmpf oeq, %37, %40 : vector<16x64xf32>
    %c16_i32_28 = arith.constant 16 : i32
    %42 = vector.broadcast %c16_i32_28 : i32 to vector<16x64xi32>
    %43 = arith.select %41, %28, %42 : vector<16x64xi1>, vector<16x64xi32>
    %cst_29 = arith.constant dense<2147483647> : vector<64xi32>
    %44 = vector.multi_reduction <minsi>, %43, %cst_29 [0] : vector<16x64xi32> to vector<64xi32>
    %45 = vector.shape_cast %44 : vector<64xi32> to vector<1x64xi32>
    %c0_30 = arith.constant 0 : index
    %c0_31 = arith.constant 0 : index
    %c0_32 = arith.constant 0 : index
    %c0_33 = arith.constant 0 : index
    %46 = vector.load %arg9[%c0_30, %c0_31, %c0_32, %c0_33] : memref<1x1x2x64xi32, #tpu.memory_space<vmem>>, vector<1x1x1x64xi32>
    %47 = vector.shape_cast %46 : vector<1x1x1x64xi32> to vector<1x64xi32>
    %48 = vector.shape_cast %36 : vector<1x64xi32> to vector<1x1x1x64xi32>
    tpu.vector_store %arg9[%c0_30, %c0_31, %c0_32, %c0_33], %48 {strides = array<i32>} : memref<1x1x2x64xi32, #tpu.memory_space<vmem>>, vector<1x1x1x64xi32>,
    %c0_34 = arith.constant 0 : index
    %c0_35 = arith.constant 0 : index
    %c1_36 = arith.constant 1 : index
    %c0_37 = arith.constant 0 : index
    %49 = vector.load %arg9[%c0_34, %c0_35, %c1_36, %c0_37] : memref<1x1x2x64xi32, #tpu.memory_space<vmem>>, vector<1x1x1x64xi32>
    %50 = vector.shape_cast %49 : vector<1x1x1x64xi32> to vector<1x64xi32>
    %51 = vector.shape_cast %45 : vector<1x64xi32> to vector<1x1x1x64xi32>
    tpu.vector_store %arg9[%c0_34, %c0_35, %c1_36, %c0_37], %51 {strides = array<i32>} : memref<1x1x2x64xi32, #tpu.memory_space<vmem>>, vector<1x1x1x64xi32>,
    return
  }
  func.func @transform_0(%arg0: i32, %arg1: i32, %arg2: i32) -> (i32, i32, i32, i32) {
    %c0_i32 = arith.constant 0 : i32
    %c0_i32_0 = arith.constant 0 : i32
    return %arg1, %arg0, %c0_i32, %arg2 : i32, i32, i32, i32
  }
  func.func @transform_1(%arg0: i32, %arg1: i32, %arg2: i32) -> (i32, i32, i32) {
    %c0_i32 = arith.constant 0 : i32
    %c0_i32_0 = arith.constant 0 : i32
    %c0_i32_1 = arith.constant 0 : i32
    return %arg0, %c0_i32, %c0_i32_0 : i32, i32, i32
  }
  func.func @transform_2(%arg0: i32, %arg1: i32, %arg2: i32) -> (i32, i32, i32) {
    %c0_i32 = arith.constant 0 : i32
    %c0_i32_0 = arith.constant 0 : i32
    %c0_i32_1 = arith.constant 0 : i32
    return %arg0, %c0_i32, %c0_i32_0 : i32, i32, i32
  }
  func.func @transform_3(%arg0: i32, %arg1: i32, %arg2: i32) -> (i32, i32, i32, i32) {
    %c0_i32 = arith.constant 0 : i32
    %c0_i32_0 = arith.constant 0 : i32
    return %arg1, %arg0, %c0_i32, %arg2 : i32, i32, i32, i32
  }
  func.func @transform_4(%arg0: i32, %arg1: i32, %arg2: i32) -> (i32, i32, i32, i32) {
    %c0_i32 = arith.constant 0 : i32
    %c0_i32_0 = arith.constant 0 : i32
    return %arg1, %arg0, %c0_i32, %arg2 : i32, i32, i32, i32
  }
  func.func @transform_5(%arg0: i32, %arg1: i32, %arg2: i32) -> (i32, i32, i32, i32) {
    %c0_i32 = arith.constant 0 : i32
    %c0_i32_0 = arith.constant 0 : i32
    return %arg1, %arg0, %c0_i32, %arg2 : i32, i32, i32, i32
  }
  func.func @transform_6(%arg0: i32, %arg1: i32, %arg2: i32) -> (i32, i32, i32, i32) {
    %c0_i32 = arith.constant 0 : i32
    %c0_i32_0 = arith.constant 0 : i32
    return %arg1, %arg0, %c0_i32, %arg2 : i32, i32, i32, i32
  }
}

</mosaic_0001>

<bundles_post_ra>
// kernel: tpu_custom_call.1
= control target key start
LH: loop header
LB: loop body
LE: loop exit
PB: predicated region body
PF: predicated region fallthrough
CT: control target
= control target key end

     0   :  { %s1584_s0 = inlined_call_operand.hbm [shape: f32[2,2,8,64], index: 0, kind: input, shape index: {}]   ;;  %s1585_s1 = inlined_call_operand.vmem [shape: f32[2,16,8], index: 1, kind: input, shape index: {}]   ;;  %s1586_s2 = inlined_call_operand.vmem [shape: f32[2,16,2], index: 2, kind: input, shape index: {}]   ;;  %s1587_s3 = inlined_call_operand.vmem [shape: f32[2,2,16,64], index: 3, kind: input, shape index: {}]   ;;  %s1588_s4 = inlined_call_operand.hbm [shape: f32[2,2,16,64], index: 4, kind: input, shape index: {}]   ;;  %s1589_s5 = inlined_call_operand.hbm [shape: f32[2,2,16,64], index: 5, kind: output, shape index: {0}]   ;;  %s1590_s6 = inlined_call_operand.hbm [shape: s32[2,2,2,64], index: 6, kind: output, shape index: {1}]  }
   0x1   :  { %1597 = sst [smem:[#allocation19_spill]] %s1584_s0 }
   0x2   :  { %12 = vsyncpa [#allocation3], 0 }
   0x3   :  { %14 = vsyncpa [#allocation3 + $0x1], 0 }
   0x4   :  { %15 = vsyncpa [#allocation6], 0 }
   0x5   :  { %17 = vsyncpa [#allocation6 + $0x1], 0 }
   0x6   :  { %18 = vsyncpa [#allocation4], 0 }
   0x7   :  { %20 = vsyncpa [#allocation4 + $0x1], 0 }
   0x8   :  { %21 = vsyncpa [#allocation9], 0 }
   0x9   :  { %23 = vsyncpa [#allocation9 + $0x1], 0  ;;  %s1258_s21 = smov 0   ;;  %s1260_s22 = smov 0  }
   0xa   :  { %s1262_s23 = smov 0   ;;  %s1264_s24 = smov 0  }
   0xb   :  { %s1266_s25 = smov 0   ;;  %s1268_s26 = smov 0  }
   0xc   :  { %s1270_s27 = smov 0   ;;  %s1272_s28 = smov 0  }
   0xd LB: > { %1598 = sst [smem:[#allocation14_spill]] %s1191_s23  ;;  %s876_s29 = sadd.s32 4294967295, %s1211_s28   ;;  %s1211_s28 = sphi %s1272_s28, %s29_s28   ;;  %s1207_s27 = sphi %s1270_s27, %s1625_s27   ;;  %s1203_s26 = sphi %s1268_s26, %s1624_s26   ;;  %s1199_s25 = sphi %s1266_s25, %s1623_s25   ;;  %s1195_s24 = sphi %s1264_s24, %s1622_s24   ;;  %s1191_s23 = sphi %s1262_s23, %s1617_s23   ;;  %s1187_s22 = sphi %s1260_s22, %s1621_s22   ;;  %s1183_s21 = sphi %s1258_s21, %s1620_s21  }
   0xe   : > { %s877_s30 = sadd.s32 4294967294, %s1211_s28   ;;  %s44_s7 = sadd.s32 1, %s1203_s26 }
   0xf   : > { %s48_s8 = sadd.s32 1, %s1207_s27  ;;  %p46_p0 = scmp.ge.s32.totalorder %s44_s7, 2 }
  0x10   : > { %s59_s9 = sadd.s32 1, %s1191_s23  ;;  %p66_p1 = scmp.ne.s32.totalorder %s1191_s23, %s1187_s22 }
  0x11   : > { %p67_p2 = scmp.eq.s32.totalorder %s1211_s28, 0  ;;  %s1627_s7 = smov (%p46_p0, %s44_s7), 0 }
  0x12   : > { %1599 = sst [smem:[#allocation15_spill]] %s1627_s7  ;;  %s1629_s8 = smov (!%p46_p0, %s48_s8), %s1207_s27 }
  0x13   : > { %s52_s10 = ssub.s32 %s1203_s26, %s1627_s7  ;;  %p1311_p3 = por %p67_p2, %p66_p1 }
  0x14   : > { %p50_p4 = scmp.ge.s32.totalorder %s1629_s8, 2  ;;  %p72_p5 = scmp.ne.s32.totalorder %s1187_s22, %s1183_s21 }
  0x15   : > { %p73_p6 = scmp.eq.s32.totalorder %s876_s29, 0  ;;  %p212_p7 = scmp.eq.s32.totalorder %s876_s29, 3 }
  0x16   : > { %s1631_s8 = smov (%p50_p4, %s1629_s8), 0  ;;  %p218_p10 = scmp.eq.s32.totalorder %s877_s30, 3 }
  0x17   : > { %1601 = sst [smem:[#allocation16_spill]] %s1631_s8  ;;  %p1319_p8 = por %p73_p6, %p72_p5 }
  0x18   : > { %p1323_p9 = por %p212_p7, %p66_p1  ;;  %s53_s14 = ssub.s32 %s1207_s27, %s1631_s8 }
  0x19   : > { %s1602_s12 = scalar_select %p1319_p8, 1, 0 }
  0x1a   : > { %s1603_s13 = scalar_select %p1323_p9, 1, 0 }
  0x1b   : > { %s54_s15 = sor.u32 %s53_s14, %s52_s10  ;;  %p1329_p12 = por %p218_p10, %p72_p5 }
  0x1c   : > { %p57_p11 = scmp.eq.s32.totalorder %s54_s15, 0  ;;  %p942_p13 = scmp.lt.s32.totalorder %s1211_s28, 4 }
  0x1d   : > { %s1604_s16 = scalar_select %p1329_p12, 1, 0 }
  0x1e   : > { %s1335_s17 = sand.u32 1, %s1191_s23   ;;  %s881_s20 = sshll.u32 %s1203_s26, 1 }
  0x1f   : > { %1605 = sst [smem:[#allocation17_spill]] %s1604_s16  ;;  %s880_s19 = sshll.u32 %s1335_s17, 3 }
  0x20   : > { %s1338_s18 = scalar_select %p57_p11, %s1191_s23, %s59_s9  }
  0x21   : > { %s278_s29 = sadd.s32 %s1207_s27, %s881_s20  ;;  %s272_s8 = scalar_lea.vmem [#allocation2], %s880_s19 }
  0x22   : > { %1606 = sst [smem:[#allocation18_spill]] %s1338_s18  ;;  %s282_s30 = sshll.u32 %s272_s8, 4  ;;  %s1343_s30 = int_to_ptr.vmem [resolvable:$true] %s282_s30 }
  0x23   : > { %s882_s7 = sshll.u32 %s278_s29, 7  ;;  %s1607_s0 = sld [smem:[#allocation19_spill]] }
  0x24   : > { %p1352_p0 = pnand %p942_p13, %p1311_p3  ;;  %s269_s8 = scalar_lea.sflag [#allocation3], %s1335_s17 }
  0x26   : > { %p1019_p5 = pneg %p1352_p0 }
  0x29   : > { %s1348_s15 = scalar_lea.hbm %s1607_s0, %s882_s7  ;;  %s1022_s20 = scalar_lea.hbm %s1607_s0, 512 }
  0x2a   : > { %s1017_s19 = scalar_lea.hbm %s1348_s15, 128  ;;  %p1023_p3 = scmp.lt.u32.totalorder %s1348_s15, %s1607_s0 }
  0x2b   : > { %p1018_p4 = scmp.ne.s32.totalorder %s1348_s15, %s1017_s19  ;;  %p1024_p10 = scmp.lt.u32.totalorder %s1022_s20, %s1017_s19 }
  0x2c   : > { %p1026_p13 = scmp.lt.u32.totalorder %s1017_s19, %s1348_s15 }
  0x2d   : > { %p1020_p6 = pnand %p1019_p5, %p1018_p4  ;;  %p1025_p11 = por %p1024_p10, %p1023_p3 }
  0x2f   : > { %p1021_p7 = pneg %p1020_p6  ;;  %p1027_p1 = por %p1026_p13, %p1025_p11 }
  0x31   : > { %p1028_p2 = pnand %p1027_p1, %p1021_p7 }
  0x33   : > { %1031 = shalt.err (!%p1028_p2)
}
  0x34   : > { %s1032_s14 = scalar_lea.vmem %s1343_s30, 128  ;;  %s1213_s7 = smov [#allocation2]  }
  0x35   : > { %p1033_p4 = scmp.ne.s32.totalorder %s1343_s30, %s1032_s14  ;;  %s1037_s11 = sshll.u32 %s1213_s7, 4  ;;  %s1038_s11 = int_to_ptr.vmem [resolvable:$false] %s1037_s11 }
  0x36   : > { %s1039_s29 = scalar_lea.vmem %s1038_s11, 256  ;;  %p1040_p9 = scmp.lt.s32.totalorder %s1343_s30, %s1038_s11 }
  0x37   : > { %p1035_p6 = pnand %p1033_p4, %p1019_p5  ;;  %p1041_p3 = scmp.lt.s32.totalorder %s1039_s29, %s1032_s14 }
  0x39   : > { %p1036_p12 = pneg %p1035_p6  ;;  %p1042_p10 = por %p1041_p3, %p1040_p9 }
  0x3b   : > { %p1043_p11 = pnand %p1042_p10, %p1036_p12 }
  0x3d   : > { %1046 = shalt.err (!%p1043_p11)
}
  0x3e   : > { %931 = dma.hbm_to_vmem [thread:$0]  (!%p1352_p0), %s1348_s15, 128, %s1343_s30, %s269_s8  }
  0x3f   : > { %p1609_p1 = scmp.lt.s32.totalorder %s1211_s28, 5  ;;  %p1610_p2 = scmp.ge.s32.totalorder %s1211_s28, 1 }
  0x40   : > { %s883_s20 = sshll.u32 %s1335_s17, 4  ;;  %s884_s10 = sshll.u32 %s1207_s27, 1 }
  0x41   : > { %p1388_p7 = pnand %p1610_p2, %p1609_p1  ;;  %s885_s14 = sshll.u32 %s1203_s26, 2 }
  0x42   : > { %s324_s7 = scalar_lea.vmem [#allocation5], %s883_s20  ;;  %s331_s29 = sadd.s32 %s885_s14, %s884_s10 }
  0x43   : > { %s334_s11 = sshll.u32 %s324_s7, 4  ;;  %s886_s0 = sshll.u32 %s331_s29, 7  ;;  %s1395_s11 = int_to_ptr.vmem [resolvable:$true] %s334_s11 }
  0x44   : > { %s1400_s16 = scalar_lea.hbm %s1588_s4, %s886_s0  ;;  %s321_s30 = scalar_lea.sflag [#allocation6], %s1335_s17 }
  0x45   : > { %s1047_s15 = scalar_lea.hbm %s1400_s16, 256  ;;  %s1052_s10 = scalar_lea.hbm %s1588_s4, 1024 }
  0x46   : > { %p1048_p9 = scmp.ne.s32.totalorder %s1400_s16, %s1047_s15  ;;  %p1053_p4 = scmp.lt.u32.totalorder %s1400_s16, %s1588_s4 }
  0x47   : > { %p1054_p6 = scmp.lt.u32.totalorder %s1052_s10, %s1047_s15  ;;  %p1056_p10 = scmp.lt.u32.totalorder %s1047_s15, %s1400_s16 }
  0x48   : > { %p1050_p12 = pnand %p1048_p9, %p1019_p5 }
  0x49   : > { %p1055_p3 = por %p1054_p6, %p1053_p4 }
  0x4a   : > { %p1051_p13 = pneg %p1050_p12 }
  0x4b   : > { %p1057_p11 = por %p1056_p10, %p1055_p3 }
  0x4d   : > { %p1058_p1 = pnand %p1057_p11, %p1051_p13 }
  0x4f   : > { %1061 = shalt.err (!%p1058_p1)
}
  0x50   : > { %s1062_s0 = scalar_lea.vmem %s1395_s11, 256  ;;  %s1214_s23 = smov [#allocation5]  }
  0x51   : > { %p1063_p2 = scmp.ne.s32.totalorder %s1395_s11, %s1062_s0  ;;  %s1067_s18 = sshll.u32 %s1214_s23, 4  ;;  %s1068_s18 = int_to_ptr.vmem [resolvable:$false] %s1067_s18 }
  0x52   : > { %s1069_s29 = scalar_lea.vmem %s1068_s18, 512  ;;  %p1070_p8 = scmp.lt.s32.totalorder %s1395_s11, %s1068_s18 }
  0x53   : > { %p1065_p9 = pnand %p1063_p2, %p1019_p5  ;;  %p1071_p4 = scmp.lt.s32.totalorder %s1069_s29, %s1062_s0 }
  0x55   : > { %p1066_p12 = pneg %p1065_p9  ;;  %p1072_p6 = por %p1071_p4, %p1070_p8 }
  0x57   : > { %p1073_p3 = pnand %p1072_p6, %p1066_p12 }
  0x59   : > { %1076 = shalt.err (!%p1073_p3)
}
  0x5a   : > { %s1215_s15 = smov 128   ;;  %s1216_s8 = smov 8  }
  0x5b   : > { %934 = dma.hbm_to_vmem [thread:$0]  (!%p1352_p0), %s1400_s16, 256, %s1395_s11, %s321_s30, %s1215_s15, %s1215_s15, %s1216_s8  }
  0x5c   : > { %346 = sbr.rel (%p1388_p7) target bundleno = 392 (0x188), region = 40  ;;  %s1431_s20 = sand.u32 (!%p1388_p7), 1, %s1187_s22  }
  0x5d   : > { %s888_s10 = sshll.u32 (!%p1388_p7), %s1431_s20, 3  ;;  %s349_s14 = scalar_lea.sflag (!%p1388_p7), [#allocation3], %s1431_s20 }
  0x5e   : > { %s352_s7 = scalar_lea.vmem (!%p1388_p7), [#allocation2], %s888_s10  ;;  %p1612_p8 = scmp.ne.s32.totalorder (!%p1388_p7), %s1602_s12, 0 }
  0x63   : > { %1166 = dma.done.wait (%p1612_p8), %s349_s14, 128  }
  0x64   : > { %1168 = vsyncadd (%p1612_p8), %s349_s14, 4294967168  ;;  %s889_s16 = sshll.u32 %s1431_s20, 4  ;;  %s358_s17 = scalar_lea.sflag [#allocation6], %s1431_s20 }
  0x65   : > { %s1443_s9 = scalar_lea.vmem [#allocation5], %s889_s16 }
  0x66   : > { %1170 = dma.done.wait (%p1612_p8), %s358_s17, 256  }
  0x67   : > { %1172 = vsyncadd (%p1612_p8), %s358_s17, 4294967040  ;;  %p422_p0 = scmp.lt.s32.totalorder %s1199_s25, 1  ;;  %v1217_v0 = vmov 0   ;;  %v1218_v1 = vmov 1   ;;  %vm453_vm0 = vcmask 64512   ;;  %v444_v2 = vld [vmem:[%s352_s7] sm:$0xff] }
  0x68   : > { %1014 = vset.pattern.permute.xlu0 %v1217_v0  ;;  %1015 = vset.pattern.permute.xlu1 %v1218_v1  ;;  %v535_v7 = vmul.f32 %v444_v2, %v444_v2  ;;  %vm536_vm1 = vcmask 523264   ;;  %p432_p5 = scmp.lt.s32.totalorder %s1195_s24, 1  ;;  %s903_s17 = sshll.u32 %s1199_s25, 1  ;;  %v452_v30 = vld [vmem:[%s1443_s9 + $0x8] sm:$0xff]  ;;  %v451_v33 = vld [vmem:[%s1443_s9] sm:$0xff] }
  0x69   : > { %s1451_s19 = scalar_select %p422_p0, %s1199_s25, 1  ;;  %915 = vmatprep.subr.mxu0 %v444_v2 }
  0x6a   : > { %916 = vmatpush3.msra.mxu0 %v444_v2  ;;  %v537_v8 = vsel %vm536_vm1, %v535_v7, 0.0  ;;  %s433_s15 = scalar_select %p432_p5, %s1195_s24, 1 }
  0x6b   : > { %s910_s11 = sshll.u32 %s1451_s19, 4  ;;  %v538_v9 = vrot.slane %v537_v8, 4  ;;  %s896_s8 = sshll.u32 %s1451_s19, 1 }
  0x6c   : > { %s426_s23 = scalar_lea.vmem %s1585_s1, %s910_s11  ;;  %s431_s12 = scalar_lea.vmem %s1586_s2, %s910_s11 }
  0x6d   : > { %v445_v3 = vld [vmem:[%s426_s23] sm:$0xff]  ;;  %v446_v4 = vld [vmem:[%s426_s23 + $0x8] sm:$0xff]  ;;  %v539_v10 = vadd.f32 %v538_v9, %v537_v8  ;;  %s897_s10 = sshll.u32 %s433_s15, 2  ;;  %s904_s11 = sshll.u32 %s1195_s24, 2 }
  0x6e   : > { %917 = vmatprep.mubr.msk.f32.mxu0 %vm453_vm0, %v445_v3  ;;  %v447_v5 = vld [vmem:[%s431_s12] sm:$0xff]  ;;  %v448_v6 = vld [vmem:[%s431_s12 + $0x8] sm:$0xff]  ;;  %s441_s14 = sadd.s32 %s897_s10, %s896_s8  ;;  %s653_s19 = sadd.s32 %s904_s11, %s903_s17 }
  0x6f   : > { %546 = vperm.xlu0 %1014, %v447_v5   ;;  %918 = vmatmul.mubr.msk.f32.vlgmr.msra.gmra.mrb[0].mxu0 %vm453_vm0, %v446_v4  ;;  %v540_v11 = vrot.slane %v539_v10, 2  ;;  %s898_s7 = sshll.u32 %s441_s14, 3  ;;  %s414_s18 = scalar_lea.vmem [#allocation7], %s889_s16 }
  0x70   : > { %561 = vperm.xlu1 %1015, %v447_v5   ;;  %s443_s23 = scalar_lea.vmem %s1587_s3, %s898_s7  ;;  %s656_s29 = sshll.u32 %s414_s18, 4  ;;  %s1475_s29 = int_to_ptr.vmem [resolvable:$true] %s656_s29 }
  0x71   : > { %v541_v12 = vadd.f32 %v540_v11, %v539_v10  ;;  %v450_v25 = vld [vmem:[%s443_s23 + $0x8] sm:$0xff]  ;;  %v449_v28 = vld [vmem:[%s443_s23] sm:$0xff]  ;;  %s905_s12 = sshll.u32 %s653_s19, 7  ;;  %s635_s9 = scalar_lea.sflag [#allocation4], %s1431_s20 }
  0x72   : > { %s1480_s16 = scalar_lea.hbm %s1589_s5, %s905_s12  ;;  %s1077_s10 = scalar_lea.vmem %s1475_s29, 256 }
  0x73   : > { %551 = vperm.xlu0 %1014, %v448_v6   ;;  %v542_v14 = vrot.slane %v541_v12, 1  ;;  %p1078_p7 = scmp.ne.s32.totalorder %s1475_s29, %s1077_s10  ;;  %p1613_p13 = scmp.ne.s32.totalorder %s1603_s13, 0 }
  0x74   : > { %565 = vperm.xlu1 %1015, %v448_v6   ;;  %s1219_s14 = smov [#allocation7]  }
  0x75   : > { %v543_v15 = vadd.f32 %v542_v14, %v541_v12  ;;  %p1079_p10 = pnand %p1078_p7, %p1613_p13  ;;  %s1081_s7 = sshll.u32 %s1219_s14, 4  ;;  %s1082_s7 = int_to_ptr.vmem [resolvable:$false] %s1081_s7 }
  0x76   : > { %s1083_s17 = scalar_lea.vmem %s1082_s7, 512  ;;  %p1084_p1 = scmp.lt.s32.totalorder %s1475_s29, %s1082_s7 }
  0x77   : > { %1016 = vset.pattern.permute.xlu0 %v1218_v1  ;;  %p1080_p11 = pneg %p1079_p10  ;;  %p1085_p2 = scmp.lt.s32.totalorder %s1083_s17, %s1077_s10 }
  0x79   : > { %p1086_p9 = por %p1085_p2, %p1084_p1 }
  0x7b   : > { %p1087_p12 = pnand %p1086_p9, %p1080_p11 }
  0xee   : > { %v547_v13 = vpop.permute.xlu0 %546 }
  0xef   : > { %v562_v16 = vpop.permute.xlu1 %561  ;;  %v554_v22 = vadd.f32 %v547_v13, %v543_v15 }
  0xf2   : > { %v552_v17 = vpop.permute.xlu0 %551 }
  0xf3   : > { %v555_v19 = vadd.f32 %v552_v17, %v543_v15  ;;  %v566_v26 = vpop.permute.xlu1 %565 }
 0x142   : > { %v919_v18 = vpop.f32.mrb[0].mxu0 }
 0x143   : > { %v557_v20 = vmul.f32 2.0, %v919_v18  ;;  %v526_v21 = vpop.f32.mrb[1].mxu0 }
 0x144   : > { %v556_v23 = vmul.f32 2.0, %v526_v21 }
 0x145   : > { %v559_v24 = vsub.f32 %v555_v19, %v557_v20 }
 0x146   : > { %v558_v27 = vsub.f32 %v554_v22, %v556_v23 }
 0x147   : > { %v569_v29 = vmul.f32 %v566_v26, %v559_v24 }
 0x148   : > { %v568_v31 = vmul.f32 %v562_v16, %v558_v27 }
 0x149   : > { %v1472_v32 = vsub.f32 %v450_v25, %v569_v29 }
 0x14a   : > { %v570_v34 = vsub.f32 %v449_v28, %v568_v31 }
 0x14b   : > { %573 = vst.msk [vmem:[%s414_s18 + $0x8] sm:$0xff] %vm536_vm1, %v1472_v32  ;;  %v578_v35 = vsel %vm536_vm1, %v1472_v32, -inf  ;;  %v1487_v36 = vadd.f32 %v1472_v32, %v452_v30 }
 0x14c   : > { %572 = vst.msk [vmem:[%s414_s18] sm:$0xff] %vm536_vm1, %v570_v34  ;;  %v577_v37 = vsel %vm536_vm1, %v570_v34, -inf  ;;  %v603_v38 = vadd.f32 %v570_v34, %v451_v33 }
 0x14d   : > { %v606_v39 = vsel %vm536_vm1, %v1487_v36, -inf  ;;  %v579_v40 = vmax.f32 %v577_v37, %v578_v35 }
 0x14e   : > { %1090 = shalt.err (!%p1087_p12)
}
 0x14f   : > { %s1091_s11 = scalar_lea.hbm %s1480_s16, 256  ;;  %s1095_s23 = scalar_lea.hbm %s1589_s5, 1024 }
 0x150   : > { %p1092_p4 = scmp.ne.s32.totalorder %s1480_s16, %s1091_s11  ;;  %p1096_p8 = scmp.lt.u32.totalorder %s1480_s16, %s1589_s5 }
 0x151   : > { %p1097_p0 = scmp.lt.u32.totalorder %s1095_s23, %s1091_s11  ;;  %p1099_p7 = scmp.lt.u32.totalorder %s1091_s11, %s1480_s16 }
 0x152   : > { %p1093_p6 = pnand %p1092_p4, %p1613_p13 }
 0x153   : > { %p1098_p5 = por %p1097_p0, %p1096_p8 }
 0x154   : > { %p1094_p3 = pneg %p1093_p6 }
 0x155   : > { %p1100_p10 = por %p1099_p7, %p1098_p5 }
 0x157   : > { %p1101_p11 = pnand %p1100_p10, %p1094_p3 }
 0x159   : > { %1104 = shalt.err (!%p1101_p11)
}
 0x15a   : > { %s1220_s12 = smov 128   ;;  %s1221_s15 = smov 8   ;;  %v605_v41 = vsel %vm536_vm1, %v603_v38, -inf  ;;  %v580_v42 = vrot.slane %v579_v40, 4  ;;  %v574_v44 = vlaneseq  ;;  %vm631_vm12 = vcmask 516096  }
 0x15b   : > { %924 = dma.vmem_to_hbm [thread:$0]  (%p1613_p13), %s1475_s29, 256, %s1480_s16, %s635_s9, %s1220_s12, %s1220_s12, %s1221_s15   ;;  %v607_v43 = vmax.f32 %v605_v41, %v606_v39 }
 0x15c   : > { %v581_v45 = vmax.f32 %v579_v40, %v580_v42  ;;  %v575_v49 = vshrl.u32 %v574_v44, 7  ;;  %s891_s29 = sshll.u32 %s1431_s20, 1  ;;  %s906_s8 = sshll.u32 %s1195_s24, 1 }
 0x15d   : > { %v608_v46 = vrot.slane %v607_v43, 4  ;;  %s671_s16 = sadd.s32 %s1199_s25, %s906_s8  ;;  %s421_s10 = scalar_lea.vmem [#allocation8], %s891_s29 }
 0x15e   : > { %v582_v47 = vrot.slane %v581_v45, 2  ;;  %v576_v54 = vadd.s32 8, %v575_v49  ;;  %s907_s9 = sshll.u32 %s671_s16, 5  ;;  %s675_s14 = sshll.u32 %s421_s10, 4  ;;  %s1532_s14 = int_to_ptr.vmem [resolvable:$true] %s675_s14 }
 0x15f   : > { %v609_v48 = vmax.f32 %v607_v43, %v608_v46  ;;  %s1530_s17 = scalar_lea.hbm %s1590_s6, %s907_s9  ;;  %s640_s25 = scalar_lea.sflag [#allocation9], %s1431_s20 }
 0x160   : > { %v583_v50 = vmax.f32 %v581_v45, %v582_v47  ;;  %s1105_s11 = scalar_lea.vmem %s1532_s14, 32  ;;  %s1222_s30 = smov [#allocation8]  }
 0x161   : > { %v610_v51 = vrot.slane %v609_v48, 2  ;;  %p1106_p1 = scmp.ne.s32.totalorder %s1532_s14, %s1105_s11  ;;  %s1109_s0 = sshll.u32 %s1222_s30, 4  ;;  %s1110_s0 = int_to_ptr.vmem [resolvable:$false] %s1109_s0 }
 0x162   : > { %v584_v52 = vrot.slane %v583_v50, 1  ;;  %s1111_s23 = scalar_lea.vmem %s1110_s0, 64  ;;  %p1112_p12 = scmp.lt.s32.totalorder %s1532_s14, %s1110_s0 }
 0x163   : > { %v611_v53 = vmax.f32 %v609_v48, %v610_v51  ;;  %p1107_p2 = pnand %p1106_p1, %p1613_p13  ;;  %p1113_p4 = scmp.lt.s32.totalorder %s1111_s23, %s1105_s11 }
 0x164   : > { %v585_v55 = vmax.f32 %v583_v50, %v584_v52 }
 0x165   : > { %v612_v56 = vrot.slane %v611_v53, 1  ;;  %p1108_p9 = pneg %p1107_p2  ;;  %p1114_p6 = por %p1113_p4, %p1112_p12 }
 0x166   : > { %vm586_vm2 = vcmp.eq.f32.partialorder %v570_v34, %v585_v55  ;;  %vm587_vm3 = vcmp.eq.f32.partialorder %v1472_v32, %v585_v55 }
 0x167   : > { %v613_v57 = vmax.f32 %v611_v53, %v612_v56  ;;  %v588_v58 = vsel %vm586_vm2, %v575_v49, 16  ;;  %v589_v59 = vsel %vm587_vm3, %v576_v54, 16  ;;  %p1115_p3 = pnand %p1114_p6, %p1108_p9 }
 0x168   : > { %v590_v60 = vsel %vm536_vm1, %v588_v58, 2147483647  ;;  %v591_v61 = vsel %vm536_vm1, %v589_v59, 2147483647 }
 0x169   : > { %vm614_vm4 = vcmp.eq.f32.partialorder %v603_v38, %v613_v57  ;;  %vm615_vm5 = vcmp.eq.f32.partialorder %v1487_v36, %v613_v57  ;;  %vm592_vm6 = vcmp.lt.s32.totalorder %v590_v60, %v591_v61 }
 0x16a   : > { %v616_v62 = vsel %vm614_vm4, %v575_v49, 16  ;;  %v617_v63 = vsel %vm615_vm5, %v576_v54, 16  ;;  %v593_v0 = vsel %vm592_vm6, %v590_v60, %v591_v61 }
 0x16b   : > { %v618_v1 = vsel %vm536_vm1, %v616_v62, 2147483647  ;;  %v619_v2 = vsel %vm536_vm1, %v617_v63, 2147483647  ;;  %v594_v3 = vrot.slane %v593_v0, 4 }
 0x16c   : > { %vm620_vm7 = vcmp.lt.s32.totalorder %v618_v1, %v619_v2 }
 0x16d   : > { %v621_v4 = vsel %vm620_vm7, %v618_v1, %v619_v2  ;;  %vm595_vm8 = vcmp.lt.s32.totalorder %v593_v0, %v594_v3 }
 0x16e   : > { %v622_v5 = vrot.slane %v621_v4, 4  ;;  %v596_v6 = vsel %vm595_vm8, %v593_v0, %v594_v3 }
 0x16f   : > { %v597_v7 = vrot.slane %v596_v6, 2 }
 0x170   : > { %vm623_vm9 = vcmp.lt.s32.totalorder %v621_v4, %v622_v5 }
 0x171   : > { %v624_v8 = vsel %vm623_vm9, %v621_v4, %v622_v5  ;;  %vm598_vm10 = vcmp.lt.s32.totalorder %v596_v6, %v597_v7 }
 0x172   : > { %v625_v9 = vrot.slane %v624_v8, 2  ;;  %v599_v10 = vsel %vm598_vm10, %v596_v6, %v597_v7 }
 0x173   : > { %v600_v11 = vrot.slane %v599_v10, 1 }
 0x174   : > { %vm626_vm11 = vcmp.lt.s32.totalorder %v624_v8, %v625_v9 }
 0x175   : > { %v627_v12 = vsel %vm626_vm11, %v624_v8, %v625_v9  ;;  %vm601_vm13 = vcmp.lt.s32.totalorder %v599_v10, %v600_v11 }
 0x176   : > { %v628_v13 = vrot.slane %v627_v12, 1  ;;  %v602_v14 = vsel %vm601_vm13, %v599_v10, %v600_v11 }
 0x177   : > { %632 = vst.msk [vmem:[%s421_s10] sm:$0x1] %vm631_vm12, %v602_v14 }
 0x178   : > { %vm629_vm14 = vcmp.lt.s32.totalorder %v627_v12, %v628_v13 }
 0x179   : > { %v630_v15 = vsel %vm629_vm14, %v627_v12, %v628_v13 }
 0x17a   : > { %633 = vst.msk [vmem:[%s421_s10 + $0x1] sm:$0x1] %vm631_vm12, %v630_v15 }
 0x17b   : > { %1118 = shalt.err (!%p1115_p3)
}
 0x17c   : > { %s1119_s20 = scalar_lea.hbm %s1530_s17, 32  ;;  %s1123_s12 = scalar_lea.hbm %s1590_s6, 128 }
 0x17d   : > { %p1120_p8 = scmp.ne.s32.totalorder %s1530_s17, %s1119_s20  ;;  %p1124_p7 = scmp.lt.u32.totalorder %s1530_s17, %s1590_s6 }
 0x17e   : > { %p1125_p10 = scmp.lt.u32.totalorder %s1123_s12, %s1119_s20  ;;  %p1127_p1 = scmp.lt.u32.totalorder %s1119_s20, %s1530_s17 }
 0x17f   : > { %p1121_p0 = pnand %p1120_p8, %p1613_p13 }
 0x180   : > { %p1126_p11 = por %p1125_p10, %p1124_p7 }
 0x181   : > { %p1122_p5 = pneg %p1121_p0 }
 0x182   : > { %p1128_p2 = por %p1127_p1, %p1126_p11 }
 0x184   : > { %p1129_p9 = pnand %p1128_p2, %p1122_p5 }
 0x186   : > { %1132 = shalt.err (!%p1129_p9)
}
 0x187   : > { %925 = dma.vmem_to_hbm [thread:$0]  (%p1613_p13), %s1532_s14, 32, %s1530_s17, %s640_s25  }
 0x188 PF: > { %s1614_s8 = sld [smem:[#allocation17_spill]]  ;;  %p943_p12 = scmp.ge.s32.totalorder %s1211_s28, 2 }
 0x189   : > { %s687_s16 = sand.u32 1, %s1183_s21  }
 0x18a   : > { %s688_s9 = scalar_lea.sflag [#allocation4], %s687_s16 }
 0x18e   : > { %p1615_p4 = scmp.ne.s32.totalorder %s1614_s8, 0 }
 0x190   : > { %p936_p6 = pnand %p943_p12, %p1615_p4 }
 0x192   : > { %1174 = dma.done.wait (!%p936_p6), %s688_s9, 256  }
 0x193   : > { %1176 = vsyncadd (!%p936_p6), %s688_s9, 4294967040  ;;  %s697_s10 = scalar_lea.sflag [#allocation9], %s687_s16 }
 0x194   : > { %1178 = dma.done.wait (!%p936_p6), %s697_s10, 32  }
 0x195   : > { %1180 = vsyncadd (!%p936_p6), %s697_s10, 4294967264  ;;  %s29_s28 = sadd.s32 1, %s1211_s28   ;;  %s1616_s13 = sld [smem:[#allocation14_spill]] }
 0x196   : > { %p26_p3 = scmp.ge.s32.totalorder %s29_s28, 6   ;;  %s1617_s23 = sld [smem:[#allocation18_spill]] }
 0x197   : > { %s1618_s14 = sld [smem:[#allocation15_spill]]  ;;  %s1619_s7 = sld [smem:[#allocation16_spill]] }
 0x198   : > { %s1620_s21 = smov %s1187_s22  ;;  %s1622_s24 = smov %s1203_s26 }
 0x199   : > { %s1623_s25 = smov %s1207_s27  ;;  %28 = sbr.rel (!%p26_p3) target bundleno = 13 (0xd), region = 124 }
 0x19b   : > { %s1621_s22 = smov %s1616_s13 }
 0x19d   : > { %s1624_s26 = smov %s1618_s14  ;;  %s1625_s27 = smov %s1619_s7 }
 0x1a0   :  { %702 = vsyncpa [#allocation3], 1 }
 0x1a1   :  { %704 = vsyncpa [#allocation3 + $0x1], 1 }
 0x1a2   :  { %705 = vsyncpa [#allocation6], 1 }
 0x1a3   :  { %707 = vsyncpa [#allocation6 + $0x1], 1 }
 0x1a4   :  { %708 = vsyncpa [#allocation4], 1 }
 0x1a5   :  { %710 = vsyncpa [#allocation4 + $0x1], 1 }
 0x1a6   :  { %711 = vsyncpa [#allocation9], 1 }
 0x1a7   :  { %713 = vsyncpa [#allocation9 + $0x1], 1 }

</bundles_post_ra>
